<compile_context>
chip_gen: v7x
topology: tpu7x:2x2x1
jax: 0.10.0
libtpu: 0.0.40
codegen_flags: <defaults>
</compile_context>

<pallas_src>
import functools

import jax
import jax.numpy as jnp
from jax import lax
from jax.experimental import pallas as pl
from jax.experimental.pallas import tpu as pltpu


def _discriminator_kernel(actual_b, tb, x_ref, w1_ref, b1_ref, w2_ref, b2_ref,
                          y_ref, prob_ref, ploss_ref):
    """One batch tile: Linear -> tanh -> Linear -> BCE partial sum."""
    i = pl.program_id(0)

    x = x_ref[...]                                    # (tb, D) f32

    # Layer 1: hid = tanh(x @ W1^T + b1).  W1 is PyTorch (out, in) layout;
    # contracting dim 1 of both operands lets the MXU consume the transposed
    # operand natively (no wrapper-side transpose HLO, no in-kernel relayout).
    xw1 = lax.dot_general(x, w1_ref[...],
                          dimension_numbers=(((1,), (1,)), ((), ())),
                          preferred_element_type=jnp.float32)
    hid = jnp.tanh(xw1 + b1_ref[...])                 # (tb, D)

    # Layer 2 directly in lane-dense (1, tb) form: z = w2 @ hid^T + b2.
    # Avoids both a (D, 1) MXU RHS and a (tb,1)->(1,tb) relayout; the logits
    # row feeds an unmasked lane-dense prob store and lane-dense BCE math.
    z = lax.dot_general(w2_ref[...], hid,
                        dimension_numbers=(((1,), (1,)), ((), ())),
                        preferred_element_type=jnp.float32) + b2_ref[0]
    prob_ref[...] = z.astype(prob_ref.dtype)          # (1, tb)

    # BCEWithLogitsLoss per element (numerically stable form):
    #   l = max(z, 0) - z*y + log(1 + exp(-|z|))
    y = y_ref[...]                                    # (1, tb)
    per = jnp.maximum(z, 0.0) - z * y + jnp.log1p(jnp.exp(-jnp.abs(z)))

    # Zero the contribution of rows added by batch padding.
    col = lax.broadcasted_iota(jnp.int32, (1, tb), 1)
    per = jnp.where(i * tb + col < actual_b, per, 0.0)

    # Per-block partial loss; batch axis is "parallel" (v7x megacore), so no
    # carried accumulator — the wrapper sums the nb partials.
    ploss_ref[...] = jnp.sum(per, axis=1, keepdims=True)


def linear_discriminator(inputs, label, w1, b1, w2, b2, *, block_b=8192):
    """Forward pass of LinearDiscriminator.

    inputs: (B, D); label: (B,)
    w1: (D, D) PyTorch layout (out, in); b1: (D,)
    w2: (1, D) PyTorch layout (out, in); b2: (1,)
    Returns {'prob': (B, 1) raw logits, 'loss': scalar BCE-with-logits mean}.
    """
    B, D = inputs.shape

    if B <= block_b:
        tb = B                         # single block == full array dims
    else:
        tb = block_b                   # multiple of (8, 128): clean tiling
    b_pad = ((B + tb - 1) // tb) * tb
    nb = b_pad // tb

    x = inputs.astype(jnp.float32)                    # identity for f32 input
    y = label.astype(jnp.float32)
    if b_pad != B:                                    # pad tail instead of
        x = jnp.pad(x, ((0, b_pad - B), (0, 0)))      # collapsing to 1 block
        y = jnp.pad(y, (0, b_pad - B))
    y = y.reshape(1, b_pad)                           # lane-dense label row

    w1f = w1.astype(jnp.float32)                      # (D, D), NOT transposed
    b1f = b1.astype(jnp.float32).reshape(1, D)
    w2f = w2.astype(jnp.float32)                      # (1, D), as-is
    b2f = b2.astype(jnp.float32)                      # (1,) -> SMEM scalar

    # Explicit scoped-VMEM budget with ~2x headroom (double-buffered x/label/
    # prob blocks + weights); stays well under every generation's physical VMEM.
    block_bytes = (2 * tb * D * 4                     # x (double-buffered)
                   + 2 * 2 * tb * 4                   # label + prob rows
                   + 2 * (D * D + 3 * D) * 4          # w1/b1/w2
                   + (1 << 14))
    vmem_limit = int(min(max(2 * block_bytes, 8 << 20), 48 << 20))

    prob_row, ploss = pl.pallas_call(
        functools.partial(_discriminator_kernel, B, tb),
        out_shape=(
            jax.ShapeDtypeStruct((1, b_pad), jnp.float32),   # logits row
            jax.ShapeDtypeStruct((1, nb), jnp.float32),      # per-block loss
        ),
        grid=(nb,),
        in_specs=[
            pl.BlockSpec((tb, D), lambda i: (i, 0)),         # x
            pl.BlockSpec((D, D), lambda i: (0, 0)),          # w1 (out, in)
            pl.BlockSpec((1, D), lambda i: (0, 0)),          # b1
            pl.BlockSpec((1, D), lambda i: (0, 0)),          # w2 (out, in)
            pl.BlockSpec(memory_space=pltpu.MemorySpace.SMEM),  # b2 scalar
            pl.BlockSpec((1, tb), lambda i: (0, i)),         # label row
        ],
        out_specs=(
            pl.BlockSpec((1, tb), lambda i: (0, i)),         # prob row
            pl.BlockSpec((1, 1), lambda i: (0, i)),          # partial loss
        ),
        compiler_params=pltpu.CompilerParams(
            dimension_semantics=("parallel",),               # no carried state
            vmem_limit_bytes=vmem_limit),
    )(x, w1f, b1f, w2f, b2f, y)

    prob = prob_row[0, :B].reshape(B, 1)      # contiguous (free) reshape
    loss = jnp.sum(ploss) * (1.0 / B)         # mean over the real batch only
    return {'prob': prob, 'loss': loss}


def _reference(inputs, label, w1, b1, w2, b2):
    hid = jnp.tanh(inputs @ w1.T + b1)
    logits = hid @ w2.T + b2                          # (B, 1)
    z = logits[:, 0]
    y = label.astype(jnp.float32)
    per = jnp.maximum(z, 0.0) - z * y + jnp.log1p(jnp.exp(-jnp.abs(z)))
    return logits, jnp.mean(per)


if __name__ == "__main__":
    key = jax.random.PRNGKey(0)
    D = 32  # config.encoder_output_size = 32

    k_w1, k_b1, k_w2, k_b2 = jax.random.split(key, 4)
    # PyTorch Linear shapes: weight (out, in), bias (out,)
    w1 = jax.random.normal(k_w1, (D, D), dtype=jnp.float32) * 0.1
    b1 = jax.random.normal(k_b1, (D,), dtype=jnp.float32) * 0.1
    w2 = jax.random.normal(k_w2, (1, D), dtype=jnp.float32) * 0.1
    b2 = jax.random.normal(k_b2, (1,), dtype=jnp.float32) * 0.1

    def check(B, block_b):
        kx, ky = jax.random.split(jax.random.fold_in(key, B))
        inputs = jax.random.normal(kx, (B, D), dtype=jnp.float32)
        label = (jax.random.uniform(ky, (B,)) > 0.5).astype(jnp.float32)

        fwd = jax.jit(functools.partial(linear_discriminator, block_b=block_b))
        out = fwd(inputs, label, w1, b1, w2, b2)
        jax.block_until_ready(out)

        ref_logits, ref_loss = _reference(inputs, label, w1, b1, w2, b2)
        assert out['prob'].shape == (B, 1)
        assert jnp.allclose(out['prob'], ref_logits, atol=1e-5, rtol=1e-4)
        assert jnp.allclose(out['loss'], ref_loss, atol=1e-5, rtol=1e-4)

    check(8, 8192)     # single-block path (B <= tile): block == full dims
    check(300, 128)    # multi-block path: padding to 384, tail masking, nb=3
    print("KERNEL_OK")
</pallas_src>

<mosaic_0001>
module attributes {stable_mosaic.version = 11 : i64} {
  func.func @_discriminator_kernel(%arg0: i32, %arg1: memref<8x32xf32, #tpu.memory_space<vmem>>, %arg2: memref<32x32xf32, #tpu.memory_space<vmem>>, %arg3: memref<1x32xf32, #tpu.memory_space<vmem>>, %arg4: memref<1x32xf32, #tpu.memory_space<vmem>>, %arg5: memref<1xf32, #tpu.memory_space<smem>>, %arg6: memref<1x8xf32, #tpu.memory_space<vmem>>, %arg7: memref<1x8xf32, #tpu.memory_space<vmem>>, %arg8: memref<1x1xf32, #tpu.memory_space<vmem>>) attributes {dimension_semantics = [#tpu.dimension_semantics<parallel>], iteration_bounds = array<i64: 1>, scalar_prefetch = 0 : i64, scratch_operands = 0 : i64, tpu.core_type = #tpu.core_type<tc>, window_params = [{transform_indices = @transform_0, window_bounds = array<i64: 8, 32>}, {pipeline_mode = #tpu.pipeline_mode<synchronous>, transform_indices = @transform_1, window_bounds = array<i64: 32, 32>}, {pipeline_mode = #tpu.pipeline_mode<synchronous>, transform_indices = @transform_2, window_bounds = array<i64: 1, 32>}, {pipeline_mode = #tpu.pipeline_mode<synchronous>, transform_indices = @transform_3, window_bounds = array<i64: 1, 32>}, {transform_indices = @transform_4, window_bounds = array<i64: 1>}, {transform_indices = @transform_5, window_bounds = array<i64: 1, 8>}, {transform_indices = @transform_6, window_bounds = array<i64: 1, 8>}, {transform_indices = @transform_7, window_bounds = array<i64: 1, 1>}]} {
    %c0 = arith.constant 0 : index
    %c0_0 = arith.constant 0 : index
    %0 = vector.load %arg1[%c0, %c0_0] : memref<8x32xf32, #tpu.memory_space<vmem>>, vector<8x32xf32>
    %c0_1 = arith.constant 0 : index
    %c0_2 = arith.constant 0 : index
    %1 = vector.load %arg2[%c0_1, %c0_2] : memref<32x32xf32, #tpu.memory_space<vmem>>, vector<32x32xf32>
    %cst = arith.constant dense<0.000000e+00> : vector<8x32xf32>
    %2 = tpu.matmul %0, %1, %cst {dimension_numbers = #tpu.dot_dimension_numbers<[1], [1], [0], [0], [0, 0, 1, 0], [], []>} : vector<8x32xf32>, vector<32x32xf32>, vector<8x32xf32> -> vector<8x32xf32>
    %c0_3 = arith.constant 0 : index
    %c0_4 = arith.constant 0 : index
    %3 = vector.load %arg3[%c0_3, %c0_4] : memref<1x32xf32, #tpu.memory_space<vmem>>, vector<1x32xf32>
    %4 = vector.broadcast %3 : vector<1x32xf32> to vector<8x32xf32>
    %5 = arith.addf %2, %4 : vector<8x32xf32>
    %6 = math.tanh %5 : vector<8x32xf32>
    %c0_5 = arith.constant 0 : index
    %c0_6 = arith.constant 0 : index
    %7 = vector.load %arg4[%c0_5, %c0_6] : memref<1x32xf32, #tpu.memory_space<vmem>>, vector<1x32xf32>
    %cst_7 = arith.constant dense<0.000000e+00> : vector<1x8xf32>
    %8 = tpu.matmul %7, %6, %cst_7 {dimension_numbers = #tpu.dot_dimension_numbers<[1], [1], [0], [0], [0, 0, 1, 0], [], []>} : vector<1x32xf32>, vector<8x32xf32>, vector<1x8xf32> -> vector<1x8xf32>
    %c0_8 = arith.constant 0 : index
    %9 = memref.load %arg5[%c0_8] : memref<1xf32, #tpu.memory_space<smem>>
    %10 = vector.broadcast %9 : f32 to vector<1x8xf32>
    %11 = arith.addf %8, %10 : vector<1x8xf32>
    %c0_9 = arith.constant 0 : index
    %c0_10 = arith.constant 0 : index
    %12 = vector.load %arg7[%c0_9, %c0_10] : memref<1x8xf32, #tpu.memory_space<vmem>>, vector<1x8xf32>
    tpu.vector_store %arg7[%c0_9, %c0_10], %11 {strides = array<i32>} : memref<1x8xf32, #tpu.memory_space<vmem>>, vector<1x8xf32>,
    %c0_11 = arith.constant 0 : index
    %c0_12 = arith.constant 0 : index
    %13 = vector.load %arg6[%c0_11, %c0_12] : memref<1x8xf32, #tpu.memory_space<vmem>>, vector<1x8xf32>
    %cst_13 = arith.constant 0.000000e+00 : f32
    %14 = vector.broadcast %cst_13 : f32 to vector<1x8xf32>
    %15 = arith.maximumf %11, %14 : vector<1x8xf32>
    %16 = arith.mulf %11, %13 : vector<1x8xf32>
    %17 = arith.subf %15, %16 : vector<1x8xf32>
    %18 = math.absf %11 : vector<1x8xf32>
    %cst_14 = arith.constant 0.000000e+00 : f32
    %19 = vector.broadcast %cst_14 : f32 to vector<1x8xf32>
    %20 = arith.subf %19, %18 : vector<1x8xf32>
    %21 = math.exp %20 : vector<1x8xf32>
    %22 = math.log1p %21 : vector<1x8xf32>
    %23 = arith.addf %17, %22 : vector<1x8xf32>
    %24 = tpu.iota {dimensions = array<i32: 1>} : vector<1x8xi32>
    %c8_i32 = arith.constant 8 : i32
    %25 = arith.muli %arg0, %c8_i32 : i32
    %26 = vector.broadcast %25 : i32 to vector<1x8xi32>
    %27 = arith.addi %26, %24 : vector<1x8xi32>
    %c8_i32_15 = arith.constant 8 : i32
    %28 = vector.broadcast %c8_i32_15 : i32 to vector<1x8xi32>
    %29 = arith.cmpi slt, %27, %28 : vector<1x8xi32>
    %cst_16 = arith.constant 0.000000e+00 : f32
    %30 = vector.broadcast %cst_16 : f32 to vector<1x8xf32>
    %31 = arith.select %29, %23, %30 : vector<1x8xi1>, vector<1x8xf32>
    %cst_17 = arith.constant dense<0.000000e+00> : vector<1xf32>
    %32 = vector.multi_reduction <add>, %31, %cst_17 [1] : vector<1x8xf32> to vector<1xf32>
    %33 = vector.shape_cast %32 : vector<1xf32> to vector<1x1xf32>
    %c0_18 = arith.constant 0 : index
    %c0_19 = arith.constant 0 : index
    %34 = vector.load %arg8[%c0_18, %c0_19] : memref<1x1xf32, #tpu.memory_space<vmem>>, vector<1x1xf32>
    tpu.vector_store %arg8[%c0_18, %c0_19], %33 {strides = array<i32>} : memref<1x1xf32, #tpu.memory_space<vmem>>, vector<1x1xf32>,
    return
  }
  func.func @transform_0(%arg0: i32) -> (i32, i32) {
    %c0_i32 = arith.constant 0 : i32
    %c0_i32_0 = arith.constant 0 : i32
    return %arg0, %c0_i32 : i32, i32
  }
  func.func @transform_1(%arg0: i32) -> (i32, i32) {
    %c0_i32 = arith.constant 0 : i32
    %c0_i32_0 = arith.constant 0 : i32
    %c0_i32_1 = arith.constant 0 : i32
    return %c0_i32, %c0_i32_0 : i32, i32
  }
  func.func @transform_2(%arg0: i32) -> (i32, i32) {
    %c0_i32 = arith.constant 0 : i32
    %c0_i32_0 = arith.constant 0 : i32
    %c0_i32_1 = arith.constant 0 : i32
    return %c0_i32, %c0_i32_0 : i32, i32
  }
  func.func @transform_3(%arg0: i32) -> (i32, i32) {
    %c0_i32 = arith.constant 0 : i32
    %c0_i32_0 = arith.constant 0 : i32
    %c0_i32_1 = arith.constant 0 : i32
    return %c0_i32, %c0_i32_0 : i32, i32
  }
  func.func @transform_4(%arg0: i32) -> i32 {
    %c0_i32 = arith.constant 0 : i32
    %c0_i32_0 = arith.constant 0 : i32
    return %c0_i32 : i32
  }
  func.func @transform_5(%arg0: i32) -> (i32, i32) {
    %c0_i32 = arith.constant 0 : i32
    %c0_i32_0 = arith.constant 0 : i32
    return %c0_i32, %arg0 : i32, i32
  }
  func.func @transform_6(%arg0: i32) -> (i32, i32) {
    %c0_i32 = arith.constant 0 : i32
    %c0_i32_0 = arith.constant 0 : i32
    return %c0_i32, %arg0 : i32, i32
  }
  func.func @transform_7(%arg0: i32) -> (i32, i32) {
    %c0_i32 = arith.constant 0 : i32
    %c0_i32_0 = arith.constant 0 : i32
    return %c0_i32, %arg0 : i32, i32
  }
}

</mosaic_0001>

<bundles_post_ra>
// kernel: linear_discriminator.1
= control target key start
LH: loop header
LB: loop body
LE: loop exit
PB: predicated region body
PF: predicated region fallthrough
CT: control target
= control target key end

     0   :  { %14 = vsyncpa [#allocation4], 0  ;;  %s512_s0 = inlined_call_operand.vmem [shape: f32[8,32], index: 0, kind: input, shape index: {}]   ;;  %s513_s1 = inlined_call_operand.hbm [shape: f32[32,32], index: 1, kind: input, shape index: {}]   ;;  %s514_s2 = inlined_call_operand.vmem [shape: f32[1,32], index: 2, kind: input, shape index: {}]   ;;  %s515_s3 = inlined_call_operand.vmem [shape: f32[1,32], index: 3, kind: input, shape index: {}]   ;;  %s516_s4 = inlined_call_operand.<no memory space> [shape: f32[1], index: 4, kind: input, shape index: {}]   ;;  %s517_s5 = inlined_call_operand.vmem [shape: f32[1,8], index: 5, kind: input, shape index: {}]   ;;  %s518_s6 = inlined_call_operand.hbm [shape: f32[1,8], index: 6, kind: output, shape index: {0}]   ;;  %s519_s7 = inlined_call_operand.hbm [shape: f32[1,1], index: 7, kind: output, shape index: {1}]  }
   0x1   :  { %15 = vsyncpa [#allocation5], 0 }
   0x2   :  { %16 = vsyncpa [#allocation8], 0  ;;  %s406_s24 = smov [#allocation3]   ;;  %s334_s28 = scalar_lea.hbm %s513_s1, 512 }
   0x3   :  { %s24_s25 = sshll.u32 %s406_s24, 4  ;;  %p335_p0 = scmp.ne.s32.totalorder %s513_s1, %s334_s28  ;;  %s25_s25 = int_to_ptr.vmem [resolvable:$true] %s24_s25 }
   0x4   :  { %p338_p1 = scmp.lt.u32.totalorder %s334_s28, %s513_s1 }
   0x6   :  { %p340_p2 = pnand %p338_p1, %p335_p0 }
   0x8   :  { %343 = shalt.err (!%p340_p2)
}
   0x9   :  { %s344_s10 = scalar_lea.vmem %s25_s25, 512  ;;  %p349_p4 = scmp.lt.s32.totalorder %s25_s25, %s25_s25 }
   0xa   :  { %p345_p3 = scmp.ne.s32.totalorder %s25_s25, %s344_s10  ;;  %p350_p5 = scmp.lt.s32.totalorder %s344_s10, %s344_s10 }
   0xc   :  { %p351_p6 = por %p350_p5, %p349_p4 }
   0xe   :  { %p352_p7 = pnand %p351_p6, %p345_p3 }
  0x10   :  { %355 = shalt.err (!%p352_p7)
}
  0x11   :  { %s407_s11 = smov 128   ;;  %s408_s12 = smov 8  }
  0x12   :  { %30 = dma.hbm_to_vmem [thread:$0]  %s513_s1, 512, %s25_s25, [#allocation4], %s407_s11, %s407_s11, %s408_s12  }
  0x13   :  { %400 = dma.done.wait [#allocation4], 512  }
  0x14   :  { %401 = vsyncadd [#allocation4], 4294966784  ;;  %v409_v0 = vmov 0.0|0.0   ;;  %vm410_vm0 = vmmov 0   ;;  %v411_v1 = vmov 0.0   ;;  %vm54_vm1 = vcmask 261120  }
  0x15   :  { %312 = vmatprep.subr.bf16.mxu0 %v409_v0  ;;  %304 = vmatprep.mubr.msk.f32.mxu0 %vm410_vm0, %v411_v1  ;;  %v43_v2 = vld [vmem:[#allocation3] sm:$0xff]  ;;  %v44_v3 = vld [vmem:[#allocation3 + $0x8] sm:$0xff]  ;;  %vm314_vm2 = vmpackc.low %vm54_vm1, %vm54_vm1  ;;  %v143_v15 = vstv %s516_s4  ;;  %vm220_vm3 = vcmask 57344   ;;  %v240_v26 = vlaneseq  ;;  %s412_s4 = smov [#allocation6]  }
  0x16   :  { %307 = vmatprep.subr.mxu1 %v411_v1  ;;  %309 = vmatprep.mubr.msk.f32.mxu1 %vm410_vm0, %v411_v1  ;;  %v313_v4 = vpack.c.bf16 %v44_v3, %v43_v2  ;;  %v45_v5 = vld [vmem:[#allocation3 + $0x10] sm:$0xff]  ;;  %v46_v6 = vld [vmem:[#allocation3 + $0x18] sm:$0xff]  ;;  %v42_v8 = vld [vmem:[%s512_s0] sm:$0xff] }
  0x17   :  { %v317_v7 = vpack.c.bf16 %v46_v6, %v45_v5  ;;  %v281_v9 = vld [vmem:[%s514_s2] ss:$0 sm:$0xff]  ;;  %v241_v31 = vand.u32 127, %v240_v26 }
  0x18   :  { %315 = vmatpush3.bf16.xpose.msk.msra.mxu0 %vm314_vm2, %v313_v4  ;;  %v141_v14 = vld [vmem:[%s515_s3] sm:$0x1] }
  0x19   :  { %316 = vmatprep.subr.bf16.mxu0 %v409_v0  ;;  %v222_v25 = vld [vmem:[%s517_s5] sm:$0x1]  ;;  %vm245_vm5 = vcmp.lt.s32.totalorder %v241_v31, 8  ;;  %s258_s5 = sshll.u32 %s412_s4, 4  ;;  %s259_s5 = int_to_ptr.vmem [resolvable:$true] %s258_s5 }
  0x1a   :  { %s356_s21 = scalar_lea.vmem %s259_s5, 16  ;;  %s360_s22 = scalar_lea.vmem %s259_s5, 32 }
  0x1b   :  { %p357_p8 = scmp.ne.s32.totalorder %s259_s5, %s356_s21  ;;  %p361_p9 = scmp.lt.s32.totalorder %s259_s5, %s259_s5 }
  0x1c   :  { %p362_p10 = scmp.lt.s32.totalorder %s360_s22, %s356_s21 }
  0x1e   :  { %p363_p11 = por %p362_p10, %p361_p9 }
  0x20   :  { %319 = vmatpush3.bf16.xpose.msk.msra.mxu0 %vm314_vm2, %v317_v7  ;;  %p364_p12 = pnand %p363_p11, %p357_p8 }
  0x27   :  { %305 = vmatmul.mubr.msk.f32.vlgmr.msra.gmra.mrb[0].mxu0 %vm54_vm1, %v42_v8 }
  0xfa   :  { %v136_v10 = vpop.f32.mrb[0].mxu0 }
  0xfb   :  { %v137_v11 = vadd.f32 %v281_v9, %v136_v10  ;;  %v306_v12 = vpop.f32.mrb[1].mxu0 }
  0xfd   :  { %328 = vtanh.f32 %v137_v11 }
 0x107   :  { %v329_v13 = vpop.eup %328 }
 0x108   :  { %308 = vmatpush3.xpose.msk.msra.mxu1 %vm54_vm1, %v329_v13 }
 0x10b   :  { %310 = vmatmul.mubr.msk.f32.vlgmr.msra.gmra.mrb[0].mxu1 %vm54_vm1, %v141_v14 }
 0x1de   :  { %v216_v16 = vpop.f32.mrb[0].mxu1 }
 0x1df   :  { %v217_v17 = vadd.f32 %v216_v16, %v143_v15  ;;  %v311_v18 = vpop.f32.mrb[1].mxu1 }
 0x1e1   :  { %v226_v19 = vand.u32 2147483647, %v217_v17  ;;  %221 = vst.msk [vmem:[#allocation6] sm:$0x1] %vm220_vm3, %v217_v17  ;;  %v223_v28 = vmax.f32 %v217_v17, 0.0  ;;  %v224_v29 = vmul.f32 %v222_v25, %v217_v17 }
 0x1e3   :  { %v227_v20 = vsub.f32 0.0, %v226_v19  ;;  %v225_v35 = vsub.f32 %v223_v28, %v224_v29 }
 0x1e5   :  { %v228_v21 = vmul.f32 1.442695, %v227_v20 }
 0x1e7   :  { %330 = vpow2.f32 %v228_v21 }
 0x1f1   :  { %v331_v22 = vpop.eup %330 }
 0x1f2   :  { %v230_v23 = vadd.f32 1.0, %v331_v22  ;;  %v233_v24 = vmul.f32 -0.5, %v331_v22  ;;  %v236_v30 = vand.u32 2147483647, %v331_v22 }
 0x1f4   :  { %332 = vlog2.f32 %v230_v23  ;;  %v234_v27 = vadd.f32 1.0, %v233_v24  ;;  %vm237_vm4 = vcmp.lt.f32.partialorder %v236_v30, 0.0004427343 }
 0x1f6   :  { %v235_v34 = vmul.f32 %v331_v22, %v234_v27 }
 0x1fe   :  { %v333_v32 = vpop.eup %332 }
 0x1ff   :  { %v232_v33 = vmul.f32 0.6931472, %v333_v32 }
 0x201   :  { %v238_v36 = vsel %vm237_vm4, %v235_v34, %v232_v33 }
 0x202   :  { %v239_v37 = vadd.f32 %v238_v36, %v225_v35 }
 0x204   :  { %v246_v38 = vsel %vm245_vm5, %v239_v37, 0.0 }
 0x205   :  { %v247_v39 = vsel %vm220_vm3, %v246_v38, 0.0 }
 0x206   :  { %248 = vadd.xlane.f32.xlu0 %v247_v39 }
 0x207   :  { %367 = shalt.err (!%p364_p12)
}
 0x208   :  { %s368_s25 = scalar_lea.hbm %s518_s6, 16 }
 0x209   :  { %p369_p13 = scmp.ne.s32.totalorder %s518_s6, %s368_s25  ;;  %p372_p0 = scmp.lt.u32.totalorder %s368_s25, %s518_s6 }
 0x20b   :  { %p374_p1 = pnand %p372_p0, %p369_p13 }
 0x20d   :  { %377 = shalt.err (!%p374_p1)
}
 0x20e   :  { %261 = dma.vmem_to_hbm [thread:$0]  %s259_s5, 16, %s518_s6, [#allocation5]   ;;  %vm250_vm6 = vcmask 0  }
 0x20f   :  { %s413_s9 = smov [#allocation7]  }
 0x210   :  { %s268_s10 = sshll.u32 %s413_s9, 4  ;;  %s269_s10 = int_to_ptr.vmem [resolvable:$true] %s268_s10 }
 0x211   :  { %s378_s11 = scalar_lea.vmem %s269_s10, 16  ;;  %s382_s12 = scalar_lea.vmem %s269_s10, 32 }
 0x212   :  { %p379_p2 = scmp.ne.s32.totalorder %s269_s10, %s378_s11  ;;  %p383_p3 = scmp.lt.s32.totalorder %s269_s10, %s269_s10 }
 0x213   :  { %p384_p4 = scmp.lt.s32.totalorder %s382_s12, %s378_s11 }
 0x215   :  { %p385_p5 = por %p384_p4, %p383_p3 }
 0x217   :  { %p386_p6 = pnand %p385_p5, %p379_p2 }
 0x293   :  { %v249_v40 = vpop.xlane.xlu0 %248 }
 0x294   :  { %251 = vst.msk [vmem:[#allocation7] sm:$0x1] %vm250_vm6, %v249_v40 }
 0x295   :  { %389 = shalt.err (!%p386_p6)
}
 0x296   :  { %s390_s1 = scalar_lea.hbm %s519_s7, 16 }
 0x297   :  { %p391_p7 = scmp.ne.s32.totalorder %s519_s7, %s390_s1  ;;  %p394_p8 = scmp.lt.u32.totalorder %s390_s1, %s519_s7 }
 0x299   :  { %p396_p9 = pnand %p394_p8, %p391_p7 }
 0x29b   :  { %399 = shalt.err (!%p396_p9)
}
 0x29c   :  { %271 = dma.vmem_to_hbm [thread:$0]  %s269_s10, 16, %s519_s7, [#allocation8]  }
 0x29d   :  { %402 = dma.done.wait [#allocation5], 16  }
 0x29e   :  { %403 = vsyncadd [#allocation5], 4294967280 }
 0x29f   :  { %404 = dma.done.wait [#allocation8], 16  }
 0x2a0   :  { %405 = vsyncadd [#allocation8], 4294967280 }
 0x2a1   :  { %278 = vsyncpa [#allocation4], 1 }
 0x2a2   :  { %279 = vsyncpa [#allocation5], 1 }
 0x2a3   :  { %280 = vsyncpa [#allocation8], 1 }

</bundles_post_ra>
